<compile_context>
chip_gen: v5e
topology: v5e:2x2
jax: 0.10.0
libtpu: 0.0.40
codegen_flags: <defaults>
</compile_context>

<pallas_src>
import functools

import jax
import jax.numpy as jnp
from jax.experimental import pallas as pl
from jax.experimental.pallas import tpu as pltpu

BN_EPS = 1e-5
_MIB = 1 << 20


# ---------------------------------------------------------------------------
# Tiling / VMEM helpers
# ---------------------------------------------------------------------------
def _round_up(v, m):
    return (v + m - 1) // m * m


def _vmem_capacity_bytes():
    try:
        return int(pltpu.get_tpu_info().vmem_capacity_bytes)
    except Exception:
        return 64 * _MIB            # conservative default (v7x physical VMEM)


def _vmem_limit(cap, *block_bytes):
    need = 2 * sum(int(b) for b in block_bytes)      # double-buffered pipeline
    hi = max(32 * _MIB, int(0.75 * cap))
    return int(min(max(4 * need, 16 * _MIB), hi))


def _choose_tiles(B, N, NJ, w_itemsize, cap):
    """Pick (batch_block, row_block) so the dominant W tile fits VMEM."""
    budget = max(4 * _MIB, cap // 12)                # bytes per W buffer
    per_row = max(NJ * w_itemsize, 1)
    max_rows = max(8, budget // per_row)
    if N <= max_rows:
        tn = N
    else:
        cands = [t for t in range(8, N, 8) if N % t == 0 and t <= max_rows]
        tn = max(cands) if cands else N              # full-dim fallback stays legal
    bblk = 1
    for cand in range(1, B + 1):
        if B % cand == 0 and cand * tn <= max(max_rows, tn) and cand * tn <= 1024:
            bblk = cand
    # v7x has 2 TensorCores: prefer >= 2 parallel grid steps when possible.
    if bblk == B and B > 1 and tn == N:
        for cand in range(B - 1, 0, -1):
            if B % cand == 0:
                bblk = cand
                break
    return bblk, tn


# ---------------------------------------------------------------------------
# Kernel 1: xp[b, n, j*C_pad + c] = sum_f x[b, n, f] * fc_w[j*F_in + f, c]
# ---------------------------------------------------------------------------
def _xp_kernel(x_ref, fcw_ref, xp_ref, *, compute_dtype):
    x = x_ref[...].astype(compute_dtype)             # (Bblk, N, F_in)
    w = fcw_ref[...].astype(compute_dtype)           # (F_in, J*C_pad)
    xp = jnp.einsum("bnf,fk->bnk", x, w, preferred_element_type=jnp.float32)
    xp_ref[...] = xp.astype(xp_ref.dtype)


# ---------------------------------------------------------------------------
# Kernel 2: y[b] = W_flat[b] @ xp[b] + fc_b  (+ BN partial sums)
# ---------------------------------------------------------------------------
def _gconv_fc_kernel(w_ref, xp_ref, fcb_ref, y_ref, psum_ref, psq_ref, *,
                     compute_dtype):
    # w_ref:  (Bblk, tn, N*J)     flattened adjacency rows (original W layout)
    # xp_ref: (Bblk, N*J, C_pad)  pre-mixed node features
    # fcb_ref:(1, 1, C_pad)       fc bias (f32)
    # y_ref:  (Bblk, tn, C_pad)   pre-BN output (f32)
    # psum/psq: (1, 1, C_pad)     per-block partial sum / sum-of-squares
    w = w_ref[...].astype(compute_dtype)
    xp = xp_ref[...].astype(compute_dtype)
    y = jnp.einsum("bnk,bkc->bnc", w, xp, preferred_element_type=jnp.float32)
    y = y + fcb_ref[...]
    y_ref[...] = y.astype(y_ref.dtype)
    psum_ref[...] = jnp.sum(y, axis=(0, 1), keepdims=True)
    psq_ref[...] = jnp.sum(y * y, axis=(0, 1), keepdims=True)


# ---------------------------------------------------------------------------
# Kernel 3: BN normalize (streaming, stats folded into scale/shift)
# ---------------------------------------------------------------------------
def _bn_apply_kernel(y_ref, scale_ref, shift_ref, o_ref):
    o_ref[...] = (y_ref[...] * scale_ref[...] + shift_ref[...]).astype(o_ref.dtype)


# ---------------------------------------------------------------------------
# Wrapper
# ---------------------------------------------------------------------------
def gconv_forward(W, x, fc_w, fc_b, bn_gamma, bn_beta, *, J, bn_bool=True,
                  compute_dtype=jnp.bfloat16):
    """Pallas implementation of Gconv.forward((W, x)) -> (W, out)."""
    B, N, N2, Jw = W.shape
    assert N2 == N and Jw == J
    F_in = x.shape[-1]
    C = fc_w.shape[-1]
    assert fc_w.shape[0] == J * F_in
    NJ = N * J
    C_pad = _round_up(C, 128)                 # lane-dense output channels
    out_dtype = x.dtype

    # ---- parameter prep (tiny, plain-JAX glue; done once per call) --------
    # fc_w (J*F_in, C) -> (F_in, J*C_pad): fcw_r[f, j*C_pad + c] = fc_w[j*F_in+f, c]
    fcw_r = fc_w.reshape(J, F_in, C).transpose(1, 0, 2)       # (F_in, J, C)
    if C_pad != C:
        fcw_r = jnp.pad(fcw_r, ((0, 0), (0, 0), (0, C_pad - C)))
        fc_b_p = jnp.pad(fc_b, (0, C_pad - C))
    else:
        fc_b_p = fc_b
    fcw_r = fcw_r.reshape(F_in, J * C_pad)
    fc_b_p = fc_b_p.reshape(1, 1, C_pad).astype(jnp.float32)

    # Free row-major view of the ORIGINAL W layout (no transpose copy).
    W_flat = W.reshape(B, N, NJ)

    cap = _vmem_capacity_bytes()
    w_isz = jnp.dtype(W.dtype).itemsize
    c_isz = jnp.dtype(compute_dtype).itemsize
    bblk, tn = _choose_tiles(B, N, NJ, w_isz, cap)
    nb, nr = B // bblk, N // tn

    # ---- kernel 1: xp = x @ fc_w_relaid ------------------------------------
    xp = pl.pallas_call(
        functools.partial(_xp_kernel, compute_dtype=compute_dtype),
        out_shape=jax.ShapeDtypeStruct((B, N, J * C_pad), compute_dtype),
        grid=(nb,),
        in_specs=[
            pl.BlockSpec((bblk, N, F_in), lambda b: (b, 0, 0)),
            pl.BlockSpec((F_in, J * C_pad), lambda b: (0, 0)),
        ],
        out_specs=pl.BlockSpec((bblk, N, J * C_pad), lambda b: (b, 0, 0)),
        compiler_params=pltpu.CompilerParams(
            dimension_semantics=("parallel",),
            vmem_limit_bytes=_vmem_limit(
                cap,
                bblk * N * F_in * jnp.dtype(x.dtype).itemsize,
                F_in * J * C_pad * jnp.dtype(fcw_r.dtype).itemsize,
                bblk * N * J * C_pad * c_isz)),
    )(x, fcw_r)
    # Free row-major view: (B, N, J*C_pad) -> (B, N*J, C_pad).
    xp = xp.reshape(B, NJ, C_pad)

    # ---- kernel 2: main matmul + bias + BN partial sums --------------------
    part_idx = lambda b, r: (b * nr + r, 0, 0)
    pre_bn, psum, psq = pl.pallas_call(
        functools.partial(_gconv_fc_kernel, compute_dtype=compute_dtype),
        out_shape=(
            jax.ShapeDtypeStruct((B, N, C_pad), jnp.float32),
            jax.ShapeDtypeStruct((nb * nr, 1, C_pad), jnp.float32),
            jax.ShapeDtypeStruct((nb * nr, 1, C_pad), jnp.float32),
        ),
        grid=(nb, nr),
        in_specs=[
            pl.BlockSpec((bblk, tn, NJ), lambda b, r: (b, r, 0)),
            pl.BlockSpec((bblk, NJ, C_pad), lambda b, r: (b, 0, 0)),
            pl.BlockSpec((1, 1, C_pad), lambda b, r: (0, 0, 0)),
        ],
        out_specs=[
            pl.BlockSpec((bblk, tn, C_pad), lambda b, r: (b, r, 0)),
            pl.BlockSpec((1, 1, C_pad), part_idx),
            pl.BlockSpec((1, 1, C_pad), part_idx),
        ],
        compiler_params=pltpu.CompilerParams(
            dimension_semantics=("parallel", "parallel"),
            vmem_limit_bytes=_vmem_limit(
                cap,
                bblk * tn * NJ * w_isz,
                bblk * NJ * C_pad * c_isz,
                C_pad * 4,
                bblk * tn * C_pad * 4,
                2 * C_pad * 4)),
    )(W_flat, xp, fc_b_p)

    if bn_bool:
        # Tiny final reduction over the per-block partials (plain JAX).
        count = jnp.float32(B * N)
        mean = jnp.sum(psum, axis=0) / count                  # (1, C_pad)
        ex2 = jnp.sum(psq, axis=0) / count
        var = jnp.maximum(ex2 - mean * mean, 0.0)             # biased (torch train)
        inv = jax.lax.rsqrt(var + BN_EPS)
        if C_pad != C:
            gamma_p = jnp.pad(bn_gamma, (0, C_pad - C))
            beta_p = jnp.pad(bn_beta, (0, C_pad - C))
        else:
            gamma_p, beta_p = bn_gamma, bn_beta
        scale2d = gamma_p.astype(jnp.float32) * inv           # (1, C_pad)
        shift2d = beta_p.astype(jnp.float32) - mean * scale2d
        scale = scale2d.reshape(1, 1, C_pad)
        shift = shift2d.reshape(1, 1, C_pad)

        out_full = pl.pallas_call(
            _bn_apply_kernel,
            out_shape=jax.ShapeDtypeStruct((B, N, C_pad), out_dtype),
            grid=(nb, nr),
            in_specs=[
                pl.BlockSpec((bblk, tn, C_pad), lambda b, r: (b, r, 0)),
                pl.BlockSpec((1, 1, C_pad), lambda b, r: (0, 0, 0)),
                pl.BlockSpec((1, 1, C_pad), lambda b, r: (0, 0, 0)),
            ],
            out_specs=pl.BlockSpec((bblk, tn, C_pad), lambda b, r: (b, r, 0)),
            compiler_params=pltpu.CompilerParams(
                dimension_semantics=("parallel", "parallel"),
                vmem_limit_bytes=_vmem_limit(
                    cap,
                    bblk * tn * C_pad * 4,
                    2 * C_pad * 4,
                    bblk * tn * C_pad * jnp.dtype(out_dtype).itemsize)),
        )(pre_bn, scale, shift)
    else:
        out_full = pre_bn.astype(out_dtype)

    out = out_full[..., :C] if C_pad != C else out_full
    return W, out


# ---------------------------------------------------------------------------
# Pure-JAX reference (mirrors the torch forward) for a sanity check
# ---------------------------------------------------------------------------
def _reference(W, x, fc_w, fc_b, bn_gamma, bn_beta, *, J, bn_bool=True):
    B, N = W.shape[0], W.shape[1]
    F_in = x.shape[-1]
    gm = jnp.einsum("bnmj,bmf->bnjf", W, x).reshape(B, N, J * F_in)
    y = gm.reshape(B * N, J * F_in) @ fc_w + fc_b
    if bn_bool:
        mean = jnp.mean(y, axis=0, keepdims=True)
        var = jnp.mean((y - mean) ** 2, axis=0, keepdims=True)
        y = (y - mean) / jnp.sqrt(var + BN_EPS) * bn_gamma + bn_beta
    return y.reshape(B, N, -1)


if __name__ == "__main__":
    # Small shapes consistent with Gconv: W (B, N, N, J), x (B, N, nf_input)
    B, N, J = 2, 16, 2
    nf_input, nf_output = 8, 32

    key = jax.random.PRNGKey(0)
    k_w, k_x, k_fc = jax.random.split(key, 3)

    W = jax.random.uniform(k_w, (B, N, N, J), dtype=jnp.float32)
    x = jax.random.normal(k_x, (B, N, nf_input), dtype=jnp.float32)

    # Deterministic parameter init (synthetic; not a checkpoint load).
    num_inputs = J * nf_input
    fc_w = (jax.random.normal(k_fc, (num_inputs, nf_output), dtype=jnp.float32)
            * (1.0 / jnp.sqrt(num_inputs)))            # stored as (in, out)
    fc_b = jnp.zeros((nf_output,), dtype=jnp.float32)
    bn_gamma = jnp.ones((nf_output,), dtype=jnp.float32)   # torch BN defaults
    bn_beta = jnp.zeros((nf_output,), dtype=jnp.float32)

    y_ref = _reference(W, x, fc_w, fc_b, bn_gamma, bn_beta, J=J, bn_bool=True)
    y_ref_nobn = _reference(W, x, fc_w, fc_b, bn_gamma, bn_beta, J=J,
                            bn_bool=False)

    # f32 compute path: should match the reference tightly.
    _, y32 = gconv_forward(W, x, fc_w, fc_b, bn_gamma, bn_beta,
                           J=J, bn_bool=True, compute_dtype=jnp.float32)
    jax.block_until_ready(y32)
    assert y32.shape == (B, N, nf_output)
    assert jnp.allclose(y32, y_ref, atol=1e-4, rtol=1e-4)

    # bf16 matmul path (native MXU rate, f32 accumulation + f32 BN).
    _, ybf = gconv_forward(W, x, fc_w, fc_b, bn_gamma, bn_beta,
                           J=J, bn_bool=True, compute_dtype=jnp.bfloat16)
    jax.block_until_ready(ybf)
    assert ybf.shape == (B, N, nf_output)
    assert jnp.allclose(ybf, y_ref, atol=5e-2, rtol=5e-2)

    # bn_bool=False path.
    _, ynb = gconv_forward(W, x, fc_w, fc_b, bn_gamma, bn_beta,
                           J=J, bn_bool=False, compute_dtype=jnp.float32)
    jax.block_until_ready(ynb)
    assert jnp.allclose(ynb, y_ref_nobn, atol=1e-4, rtol=1e-4)

    print("KERNEL_OK")
</pallas_src>

<mosaic_0001>
module attributes {stable_mosaic.version = 11 : i64} {
  func.func @_xp_kernel(%arg0: i32, %arg1: memref<1x16x8xf32, #tpu.memory_space<vmem>>, %arg2: memref<8x256xf32, #tpu.memory_space<vmem>>, %arg3: memref<1x16x256xf32, #tpu.memory_space<vmem>>) attributes {dimension_semantics = [#tpu.dimension_semantics<parallel>], iteration_bounds = array<i64: 2>, scalar_prefetch = 0 : i64, scratch_operands = 0 : i64, tpu.core_type = #tpu.core_type<tc>, window_params = [{transform_indices = @transform_0, window_bounds = array<i64: 1, 16, 8>}, {pipeline_mode = #tpu.pipeline_mode<synchronous>, transform_indices = @transform_1, window_bounds = array<i64: 8, 256>}, {transform_indices = @transform_2, window_bounds = array<i64: 1, 16, 256>}]} {
    %c0 = arith.constant 0 : index
    %c0_0 = arith.constant 0 : index
    %c0_1 = arith.constant 0 : index
    %0 = vector.load %arg1[%c0, %c0_0, %c0_1] : memref<1x16x8xf32, #tpu.memory_space<vmem>>, vector<1x16x8xf32>
    %c0_2 = arith.constant 0 : index
    %c0_3 = arith.constant 0 : index
    %1 = vector.load %arg2[%c0_2, %c0_3] : memref<8x256xf32, #tpu.memory_space<vmem>>, vector<8x256xf32>
    "tpu.trace_start"() <{level = 10 : i32, message = "bnf,fk->bnk"}> : () -> ()
    %cst = arith.constant dense<0.000000e+00> : vector<1x16x256xf32>
    %2 = tpu.matmul %0, %1, %cst {dimension_numbers = #tpu.dot_dimension_numbers<[2], [0], [0, 1], [1], [0, 0, 0, 1, 1, 1], [], []>} : vector<1x16x8xf32>, vector<8x256xf32>, vector<1x16x256xf32> -> vector<1x16x256xf32>
    "tpu.trace_stop"() : () -> ()
    %c0_4 = arith.constant 0 : index
    %c0_5 = arith.constant 0 : index
    %c0_6 = arith.constant 0 : index
    %3 = vector.load %arg3[%c0_4, %c0_5, %c0_6] : memref<1x16x256xf32, #tpu.memory_space<vmem>>, vector<1x16x256xf32>
    tpu.vector_store %arg3[%c0_4, %c0_5, %c0_6], %2 {strides = array<i32>} : memref<1x16x256xf32, #tpu.memory_space<vmem>>, vector<1x16x256xf32>,
    return
  }
  func.func @transform_0(%arg0: i32) -> (i32, i32, i32) {
    %c0_i32 = arith.constant 0 : i32
    %c0_i32_0 = arith.constant 0 : i32
    %c0_i32_1 = arith.constant 0 : i32
    return %arg0, %c0_i32, %c0_i32_0 : i32, i32, i32
  }
  func.func @transform_1(%arg0: i32) -> (i32, i32) {
    %c0_i32 = arith.constant 0 : i32
    %c0_i32_0 = arith.constant 0 : i32
    %c0_i32_1 = arith.constant 0 : i32
    return %c0_i32, %c0_i32_0 : i32, i32
  }
  func.func @transform_2(%arg0: i32) -> (i32, i32, i32) {
    %c0_i32 = arith.constant 0 : i32
    %c0_i32_0 = arith.constant 0 : i32
    %c0_i32_1 = arith.constant 0 : i32
    return %arg0, %c0_i32, %c0_i32_0 : i32, i32, i32
  }
}

</mosaic_0001>

<bundles_post_ra>
// kernel: tpu_custom_call.1
= control target key start
LH: loop header
LB: loop body
LE: loop exit
PB: predicated region body
PF: predicated region fallthrough
CT: control target
= control target key end

     0   :  { %7 = vsyncpa [#allocation3], 0  ;;  %s514_s0 = inlined_call_operand.vmem [shape: f32[2,16,8], index: 0, kind: input, shape index: {}]   ;;  %s515_s1 = inlined_call_operand.vmem [shape: f32[8,256], index: 1, kind: input, shape index: {}]   ;;  %s516_s2 = inlined_call_operand.hbm [shape: f32[2,16,256], index: 2, kind: output, shape index: {}]  }
   0x1   :  { %9 = vsyncpa [#allocation3 + $0x1], 0  ;;  %s423_s9 = smov 0   ;;  %s425_s10 = smov 0  }
   0x2   :  { %s427_s11 = smov 0   ;;  %s429_s12 = smov 0  }
   0x3 LB: > { %s444_s13 = sadd.s32 4294967295, %s404_s12   ;;  %s281_s14 = sadd.s32 4294967294, %s404_s12   ;;  %s404_s12 = sphi %s429_s12, %s522_s12   ;;  %s400_s11 = sphi %s427_s11, %s521_s11   ;;  %s396_s10 = sphi %s425_s10, %s520_s10   ;;  %s392_s9 = sphi %s423_s9, %s519_s9  }
   0x4   : > { %s448_s15 = sadd.s32 1, %s404_s12   ;;  %s69_s16 = sadd.s32 1, %s400_s11 }
   0x5   : > { %s66_s17 = ssub.s32 %s404_s12, %s448_s15  ;;  %p79_p0 = scmp.ne.s32.totalorder %s400_s11, %s396_s10 }
   0x6   : > { %p67_p1 = scmp.eq.s32.totalorder %s66_s17, 0  ;;  %p80_p2 = scmp.eq.s32.totalorder %s444_s13, 1 }
   0x7   : > { %p85_p3 = scmp.ne.s32.totalorder %s396_s10, %s392_s9  ;;  %p86_p4 = scmp.eq.s32.totalorder %s281_s14, 1 }
   0x8   : > { %s459_s18 = scalar_select %p67_p1, %s400_s11, %s69_s16  }
   0x9   : > { %p461_p5 = por %p80_p2, %p79_p0  ;;  %p465_p6 = por %p86_p4, %p85_p3 }
   0xa   : > { %p284_p7 = scmp.ge.s32.totalorder %s404_s12, 1  ;;  %p115_p8 = scmp.lt.s32.totalorder %s404_s12, 3 }
   0xc   : > { %p116_p9 = pnand %p284_p7, %p115_p8 }
   0xd   : > { %p137_p10 = scmp.lt.s32.totalorder (!%p116_p9), %s444_s13, 1  ;;  %s134_s30 = sand.u32 (!%p116_p9), 1, %s396_s10  }
   0xe   : > { %119 = sbr.rel (%p116_p9) target bundleno = 161 (0xa1), region = 28  ;;  %s285_s3 = sshll.u32 (!%p116_p9), %s134_s30, 5 }
   0xf   : > { %s298_s4 = sshll.u32 (!%p116_p9), %s444_s13, 5  ;;  %s136_s8 = scalar_lea.vmem (!%p116_p9), [#allocation2], %s285_s3 }
  0x10   : > { %s215_s7 = scalar_lea.hbm (!%p116_p9), %s516_s2, %s298_s4  ;;  %s216_s14 = sshll.u32 (!%p116_p9), %s136_s8, 4  ;;  %s217_s14 = int_to_ptr.vmem [resolvable:$true] %s216_s14 }
  0x11   : > { %s218_s16 = sshll.u32 (!%p116_p9), %s215_s7, 4  ;;  %s204_s17 = scalar_lea.sflag (!%p116_p9), [#allocation3], %s134_s30  ;;  %s219_s16 = int_to_ptr.hbm [resolvable:$true] %s218_s16 }
  0x12   : > { %s362_s24 = scalar_lea.hbm (!%p116_p9), %s516_s2, 64 }
  0x13   : > { %v144_v0 = vld [vmem:[%s515_s1] sm:$0xff]  ;;  %v145_v1 = vld [vmem:[%s515_s1 + $0x8] sm:$0xff]  ;;  %s138_s25 = scalar_select %p137_p10, %s444_s13, 1  ;;  %vm146_vm0 = vcmask 64512  }
  0x14   : > { %299 = vmatpush.msra.mxu2 %v144_v0  ;;  %300 = vmatpush.msra.mxu3 %v145_v1  ;;  %s356_s13 = sshra.s32 %s219_s16, 4  ;;  %s357_s13 = int_to_ptr.hbm [resolvable:$true] %s356_s13 }
  0x15   : > { %168 = vmatpush.msra.mxu0 %v144_v0  ;;  %191 = vmatpush.msra.mxu1 %v145_v1  ;;  %s297_s26 = sshll.u32 %s138_s25, 4  ;;  %s358_s21 = scalar_lea.hbm %s357_s13, 32 }
  0x16   : > { %s141_s29 = scalar_lea.vmem %s514_s0, %s297_s26  ;;  %p359_p11 = scmp.ne.s32.totalorder %s357_s13, %s358_s21 }
  0x17   : > { %v143_v2 = vld [vmem:[%s141_s29 + $0x8] sm:$0xff]  ;;  %v142_v3 = vld [vmem:[%s141_s29] sm:$0xff]  ;;  %p363_p0 = scmp.lt.s32.totalorder %s357_s13, %s516_s2  ;;  %p364_p1 = scmp.lt.s32.totalorder %s362_s24, %s358_s21 }
  0x18   : > { %289 = vmatmul.msk.f32.vlgmr.msra.gmra.mxu2 %vm146_vm0, %v143_v2  ;;  %291 = vmatmul.msk.f32.vlgmr.msra.gmra.mxu3 %vm146_vm0, %v143_v2  ;;  %p360_p12 = pnand %p359_p11, %p461_p5 }
  0x19   : > { %288 = vmatmul.msk.f32.vlgmr.msra.gmra.mxu0 %vm146_vm0, %v142_v3  ;;  %290 = vmatmul.msk.f32.vlgmr.msra.gmra.mxu1 %vm146_vm0, %v142_v3  ;;  %p365_p2 = por %p364_p1, %p363_p0 }
  0x1a   : > { %p361_p13 = pneg %p360_p12 }
  0x1c   : > { %p366_p3 = pnand %p365_p2, %p361_p13 }
  0x96   : > { %v170_v4 = vpop.f32.mrf.mxu0  ;;  %v193_v5 = vpop.f32.mrf.mxu1 }
  0x97   : > { %199 = vst [vmem:[%s136_s8] sm:$0xff] %v170_v4 }
  0x98   : > { %200 = vst [vmem:[%s136_s8 + $0x8] sm:$0xff] %v193_v5 }
  0x9b   : > { %v173_v6 = vpop.f32.mrf.mxu2  ;;  %v196_v7 = vpop.f32.mrf.mxu3 }
  0x9c   : > { %201 = vst [vmem:[%s136_s8 + $0x10] sm:$0xff] %v173_v6 }
  0x9d   : > { %202 = vst [vmem:[%s136_s8 + $0x18] sm:$0xff] %v196_v7 }
  0x9e   : > { %369 = shalt.err (!%p366_p3)
}
  0x9f   : > { %s406_s27 = smov 256   ;;  %s407_s28 = smov 16  }
  0xa0   : > { %301 = dma.vmem_to_hbm [thread:$0]  (%p461_p5), %s217_s14, 512, %s219_s16, %s204_s17, %s406_s27, %s406_s27, %s407_s28  }
  0xa1 PF: > { %p307_p4 = scmp.ge.s32.totalorder %s404_s12, 2  ;;  %s233_s29 = sand.u32 1, %s392_s9  }
  0xa2   : > { %s234_s30 = scalar_lea.sflag [#allocation3], %s233_s29 }
  0xa3   : > { %p304_p7 = pnand %p307_p4, %p465_p6 }
  0xa5   : > { %p305_p8 = pneg %p304_p7 }
  0xa7   : > { %387 = dma.done.wait (%p305_p8), %s234_s30, 512  }
  0xa8   : > { %389 = vsyncadd (%p305_p8), %s234_s30, 4294966784  ;;  %p12_p9 = scmp.ge.s32.totalorder %s448_s15, 4   ;;  %s519_s9 = smov %s396_s10 }
  0xa9   : > { %s520_s10 = smov %s400_s11  ;;  %s521_s11 = smov %s459_s18 }
  0xaa   : > { %s522_s12 = smov %s448_s15  ;;  %14 = sbr.rel (!%p12_p9) target bundleno = 3 (0x3), region = 63 }
  0xaf   :  { %240 = vsyncpa [#allocation3], 1 }
  0xb0   :  { %242 = vsyncpa [#allocation3 + $0x1], 1 }

</bundles_post_ra>
